<compile_context>
chip_gen: v7x
topology: tpu7x:2x2x1
jax: 0.10.0
libtpu: 0.0.40
codegen_flags: <defaults>
</compile_context>

<pallas_src>
import math

import numpy as np
import jax
import jax.numpy as jnp
from jax.experimental import pallas as pl
from jax.experimental.pallas import tpu as pltpu


# ----------------------------------------------------------------------------
# Kernel factory: fused (transpose) + positional add + (inverted) dropout.
#   x block   : (bb, ts, H)   batch-major encoder output
#   pos block : (ts, H)       sinusoidal positional embedding tile
#   out block : (ts, bb*H)    seq-major, lane-dense; out[s, b*H + h] = x[b, s, h] + pos[s, h]
# ----------------------------------------------------------------------------
def _make_kernel(*, bb, H, ts, p, apply_dropout, use_device_prng):
    if apply_dropout:
        inv_keep = 1.0 / (1.0 - p)
        # keep iff bits >= p * 2^32  (P(keep) = 1 - p); numpy scalar -> traced as a literal,
        # NOT a captured jnp constant (this was the previous compile failure).
        thresh = np.uint32(min(int(round(p * 4294967296.0)), 4294967295))

    if not apply_dropout:
        def kernel(x_ref, pos_ref, o_ref):
            for b in range(bb):  # bounded unroll (bb <= 8); pos re-read per iteration
                o_ref[:, b * H:(b + 1) * H] = (x_ref[b] + pos_ref[...]).astype(o_ref.dtype)
        return kernel

    if use_device_prng:
        def kernel(seed_ref, x_ref, pos_ref, o_ref):
            # Independent stream per grid step (order-free -> "parallel" axes stay valid).
            pltpu.prng_seed(seed_ref[0], pl.program_id(0), pl.program_id(1))
            for b in range(bb):
                v = x_ref[b] + pos_ref[...]
                # Per-row bits: (ts, H) live range instead of (ts, bb*H) (less spill).
                bits = pltpu.bitcast(pltpu.prng_random_bits((ts, H)), jnp.uint32)
                keep = bits >= thresh
                o_ref[:, b * H:(b + 1) * H] = jnp.where(
                    keep, v * inv_keep, 0.0).astype(o_ref.dtype)
        return kernel

    def kernel(x_ref, pos_ref, bits_ref, o_ref):          # host-generated bits fallback
        for b in range(bb):
            v = x_ref[b] + pos_ref[...]
            keep = bits_ref[:, b * H:(b + 1) * H] >= thresh
            o_ref[:, b * H:(b + 1) * H] = jnp.where(
                keep, v * inv_keep, 0.0).astype(o_ref.dtype)
    return kernel


# ----------------------------------------------------------------------------
# Tiling heuristics.
# ----------------------------------------------------------------------------
def _default_block_bytes():
    """~2 MiB per block on v5e (16 MiB default scoped VMEM); ~4 MiB on newer TPUs
    (amortizes the ~0.35 us per-grid-step overhead against faster HBM)."""
    try:
        if jax.default_backend() != "tpu":
            return 2 << 20
        kind = jax.devices()[0].device_kind.lower()
    except Exception:
        return 2 << 20
    if "v5 lite" in kind or "v5lite" in kind or "v5e" in kind:
        return 2 << 20
    return 4 << 20


def _pick_tiles(S, B, H, itemsize, *, target_block_bytes, bits_itemsize=0):
    """Choose (seq_tile ts, batch_block bb).

    bb: largest divisor of B that is <= 8 (small bounded in-kernel unroll); forced to 1 if
        H is not a multiple of 128 (per-row lane offsets must stay aligned).
    ts: from a per-block byte budget, capped so the grid keeps >= ~8 steps (pipelining
        depth + v7x two-TensorCore sharding), and made to divide S.
    """
    bb = 1
    if H % 128 == 0:
        for d in range(min(B, 8), 0, -1):
            if B % d == 0:
                bb = d
                break
    per_row = bb * H * (itemsize + bits_itemsize)
    ts = max(8, (target_block_bytes // max(1, per_row)) // 8 * 8)
    ts = min(ts, S)
    nb = max(1, B // bb)
    want_seq_tiles = -(-8 // nb)                      # ceil(8 / nb) total-steps target
    if S // 8 >= want_seq_tiles:
        ts = min(ts, max(8, (S // want_seq_tiles) // 8 * 8))
    while ts > 8 and S % ts:                          # make ts divide S
        ts -= 8
    if S % ts:
        ts = S                                        # tiny / odd S: one full-sequence tile
    return ts, bb


# ----------------------------------------------------------------------------
# Wrapper: fused transpose + pos-add + dropout of the PyTorch module.
# ----------------------------------------------------------------------------
def posemb_dropout(x_bsh, pos_emb, *, p=0.2, training=True, seed=0, rng_key=None,
                   target_block_bytes=None):
    """x_bsh: [B, S, H] encoder output (batch-major). pos_emb: [max_len, 1, H].
    Returns [S, B, H] = Dropout(p)(x.transpose(0, 1) + pos_emb[:S])."""
    B, S, H = x_bsh.shape
    dtype = x_bsh.dtype
    pos2d = pos_emb[:S, 0, :].astype(dtype)                       # [S, H]

    # Lane-alignment guard: pad H to a multiple of 128 so per-row stores at column offsets
    # b*H stay unmasked vst (KoBERT's H=768 is already aligned -> no-op).
    Hp = -(-H // 128) * 128
    if Hp != H:
        x_bsh = jnp.pad(x_bsh, ((0, 0), (0, 0), (0, Hp - H)))
        pos2d = jnp.pad(pos2d, ((0, 0), (0, Hp - H)))

    apply_dropout = bool(training) and float(p) > 0.0
    # On-chip PRNG only lowers on a real TPU backend; fall back to host bits elsewhere
    # (CPU / interpret sandbox) so the kernel always runs.
    use_device_prng = apply_dropout and (jax.default_backend() == "tpu")

    itemsize = jnp.dtype(dtype).itemsize
    if target_block_bytes is None:
        target_block_bytes = _default_block_bytes()
    bits_itemsize = 4 if (apply_dropout and not use_device_prng) else 0
    ts, bb = _pick_tiles(S, B, Hp, itemsize,
                         target_block_bytes=target_block_bytes,
                         bits_itemsize=bits_itemsize)
    grid = (S // ts, B // bb)       # batch axis is minor: pos block index unchanged over it

    in_specs, args = [], []
    if use_device_prng:
        in_specs.append(pl.BlockSpec(memory_space=pltpu.MemorySpace.SMEM))   # dropout seed
        args.append(jnp.asarray([seed], dtype=jnp.int32))

    in_specs += [
        pl.BlockSpec((bb, ts, Hp), lambda s, b: (b, s, 0)),       # x, batch-major
        pl.BlockSpec((ts, Hp), lambda s, b: (s, 0)),              # positional tile
    ]
    args += [x_bsh, pos2d]

    if apply_dropout and not use_device_prng:
        key = rng_key if rng_key is not None else jax.random.PRNGKey(seed)
        # TODO(synk): 8/16-bit host bits would cut fallback HBM traffic 2-4x; kept uint32
        # since all real TPU targets take the on-chip PRNG path.
        bits = jax.random.bits(key, (S, B * Hp), dtype=jnp.uint32)
        in_specs.append(pl.BlockSpec((ts, bb * Hp), lambda s, b: (s, b)))
        args.append(bits)

    kernel = _make_kernel(bb=bb, H=Hp, ts=ts, p=float(p),
                          apply_dropout=apply_dropout,
                          use_device_prng=use_device_prng)

    # Explicit scoped-VMEM limit sized from the actual double-buffered block set
    # (>= default everywhere, <= v7x's 64 MiB physical VMEM).
    blk_bytes = (bb * ts * Hp * itemsize                   # x block
                 + ts * Hp * itemsize                      # pos block
                 + ts * bb * Hp * itemsize                 # out block
                 + ts * bb * Hp * bits_itemsize)           # host-bits block (fallback only)
    vmem_limit = int(min(64 << 20, max(32 << 20, 4 * blk_bytes + (4 << 20))))

    out2d = pl.pallas_call(
        kernel,
        out_shape=jax.ShapeDtypeStruct((S, B * Hp), dtype),       # seq-major, lane-dense
        grid=grid,
        in_specs=in_specs,
        out_specs=pl.BlockSpec((ts, bb * Hp), lambda s, b: (s, b)),
        compiler_params=pltpu.CompilerParams(
            dimension_semantics=("parallel", "parallel"),         # independent tiles
            vmem_limit_bytes=vmem_limit,
        ),
    )(*args)

    out = out2d.reshape(S, B, Hp)                                  # free reshape
    return out[..., :H] if Hp != H else out


# ----------------------------------------------------------------------------
# Plain-JAX glue: buffer setup (mirrors __init__) + encoder stand-in.
# ----------------------------------------------------------------------------
def make_pos_embedding(max_len: int, emb_size: int) -> jnp.ndarray:
    """Sinusoidal buffer exactly as in BertPositionalEmb.__init__  -> [max_len, 1, emb]."""
    den = jnp.exp(-jnp.arange(0, emb_size, 2, dtype=jnp.float32)
                  * (math.log(10000.0) / emb_size))
    pos = jnp.arange(0, max_len, dtype=jnp.float32).reshape(max_len, 1)
    pe = jnp.zeros((max_len, emb_size), jnp.float32)
    pe = pe.at[:, 0::2].set(jnp.sin(pos * den))
    pe = pe.at[:, 1::2].set(jnp.cos(pos * den))
    return pe[:, None, :]


def kobert_standin(token_ids, mask, emb_table):
    """Deterministic stand-in for the frozen PreKoBert encoder: embedding lookup."""
    h = jnp.take(emb_table, token_ids, axis=0)            # [B, S, H]
    return h * mask[..., None].astype(h.dtype)


def bert_positional_emb_forward(token_ids, mask, emb_table, pos_emb,
                                seed=0, p=0.2, training=True, rng_key=None):
    h = kobert_standin(token_ids, mask, emb_table)         # [B, S, H]
    # No jnp.transpose here: the seq-major layout is produced inside the kernel.
    return posemb_dropout(h, pos_emb, p=p, training=training, seed=seed, rng_key=rng_key)


# ----------------------------------------------------------------------------
if __name__ == "__main__":
    # Small, lane-aligned shapes (H multiple of 128; real KoBERT H=768 is also aligned).
    B, S, H = 2, 8, 128
    MAX_LEN = 2000
    VOCAB = 100
    P = 0.2

    key = jax.random.PRNGKey(0)
    k_tok, k_emb, k_drop = jax.random.split(key, 3)

    token_ids = jax.random.randint(k_tok, (B, S), 0, VOCAB, dtype=jnp.int32)
    mask = jnp.ones((B, S), dtype=jnp.int32)
    emb_table = jax.random.normal(k_emb, (VOCAB, H), dtype=jnp.float32) * 0.02
    pos_emb = make_pos_embedding(MAX_LEN, H)               # [2000, 1, 128]

    # Pure-JAX reference of the module forward (eval mode: dropout is identity).
    h_ref = jnp.transpose(kobert_standin(token_ids, mask, emb_table), (1, 0, 2))
    ref = h_ref + pos_emb[:S]                              # [S, B, H]

    # Eval mode.
    out_eval = bert_positional_emb_forward(token_ids, mask, emb_table, pos_emb,
                                           seed=0, p=P, training=False)
    assert out_eval.shape == (S, B, H)
    assert jnp.allclose(out_eval, ref, atol=1e-6), "eval mismatch vs reference"

    # Train mode (dropout active): every element must be 0 or ref / (1 - p).
    out_train = bert_positional_emb_forward(token_ids, mask, emb_table, pos_emb,
                                            seed=0, p=P, training=True, rng_key=k_drop)
    scaled = ref / (1.0 - P)
    ok = jnp.isclose(out_train, 0.0, atol=1e-6) | jnp.isclose(out_train, scaled,
                                                              rtol=1e-5, atol=1e-5)
    assert bool(jnp.all(ok)), "train-mode dropout structure mismatch"

    jax.block_until_ready((out_eval, out_train))
    print("KERNEL_OK")
</pallas_src>

<mosaic_0001>
module attributes {stable_mosaic.version = 11 : i64} {
  func.func @kernel(%arg0: i32, %arg1: i32, %arg2: memref<2x8x128xf32, #tpu.memory_space<vmem>>, %arg3: memref<8x128xf32, #tpu.memory_space<vmem>>, %arg4: memref<8x256xf32, #tpu.memory_space<vmem>>) attributes {dimension_semantics = [#tpu.dimension_semantics<parallel>, #tpu.dimension_semantics<parallel>], iteration_bounds = array<i64: 1, 1>, scalar_prefetch = 0 : i64, scratch_operands = 0 : i64, tpu.core_type = #tpu.core_type<tc>, window_params = [{transform_indices = @transform_0, window_bounds = array<i64: 2, 8, 128>}, {transform_indices = @transform_1, window_bounds = array<i64: 8, 128>}, {transform_indices = @transform_2, window_bounds = array<i64: 8, 256>}]} {
    %c0 = arith.constant 0 : index
    %c0_0 = arith.constant 0 : index
    %c0_1 = arith.constant 0 : index
    %0 = vector.load %arg2[%c0, %c0_0, %c0_1] : memref<2x8x128xf32, #tpu.memory_space<vmem>>, vector<1x8x128xf32>
    %1 = vector.shape_cast %0 : vector<1x8x128xf32> to vector<8x128xf32>
    %c0_2 = arith.constant 0 : index
    %c0_3 = arith.constant 0 : index
    %2 = vector.load %arg3[%c0_2, %c0_3] : memref<8x128xf32, #tpu.memory_space<vmem>>, vector<8x128xf32>
    %3 = arith.addf %1, %2 : vector<8x128xf32>
    %c0_4 = arith.constant 0 : index
    %c0_5 = arith.constant 0 : index
    %4 = vector.load %arg4[%c0_4, %c0_5] : memref<8x256xf32, #tpu.memory_space<vmem>>, vector<8x128xf32>
    tpu.vector_store %arg4[%c0_4, %c0_5], %3 {strides = array<i32>} : memref<8x256xf32, #tpu.memory_space<vmem>>, vector<8x128xf32>,
    %c1 = arith.constant 1 : index
    %c0_6 = arith.constant 0 : index
    %c0_7 = arith.constant 0 : index
    %5 = vector.load %arg2[%c1, %c0_6, %c0_7] : memref<2x8x128xf32, #tpu.memory_space<vmem>>, vector<1x8x128xf32>
    %6 = vector.shape_cast %5 : vector<1x8x128xf32> to vector<8x128xf32>
    %c0_8 = arith.constant 0 : index
    %c0_9 = arith.constant 0 : index
    %7 = vector.load %arg3[%c0_8, %c0_9] : memref<8x128xf32, #tpu.memory_space<vmem>>, vector<8x128xf32>
    %8 = arith.addf %6, %7 : vector<8x128xf32>
    %c0_10 = arith.constant 0 : index
    %c128 = arith.constant 128 : index
    %9 = vector.load %arg4[%c0_10, %c128] : memref<8x256xf32, #tpu.memory_space<vmem>>, vector<8x128xf32>
    tpu.vector_store %arg4[%c0_10, %c128], %8 {strides = array<i32>} : memref<8x256xf32, #tpu.memory_space<vmem>>, vector<8x128xf32>,
    return
  }
  func.func @transform_0(%arg0: i32, %arg1: i32) -> (i32, i32, i32) {
    %c0_i32 = arith.constant 0 : i32
    %c0_i32_0 = arith.constant 0 : i32
    return %arg1, %arg0, %c0_i32 : i32, i32, i32
  }
  func.func @transform_1(%arg0: i32, %arg1: i32) -> (i32, i32) {
    %c0_i32 = arith.constant 0 : i32
    %c0_i32_0 = arith.constant 0 : i32
    return %arg0, %c0_i32 : i32, i32
  }
  func.func @transform_2(%arg0: i32, %arg1: i32) -> (i32, i32) {
    %c0_i32 = arith.constant 0 : i32
    return %arg0, %arg1 : i32, i32
  }
}

</mosaic_0001>

<bundles_post_ra>
// kernel: tpu_custom_call.1
= control target key start
LH: loop header
LB: loop body
LE: loop exit
PB: predicated region body
PF: predicated region fallthrough
CT: control target
= control target key end

     0   :  { %7 = vsyncpa [#allocation3], 0  ;;  %s196_s0 = inlined_call_operand.hbm [shape: f32[2,8,128], index: 0, kind: input, shape index: {}]   ;;  %s197_s1 = inlined_call_operand.hbm [shape: f32[8,128], index: 1, kind: input, shape index: {}]   ;;  %s198_s2 = inlined_call_operand.hbm [shape: f32[8,256], index: 2, kind: output, shape index: {}]  }
   0x1   :  { %8 = vsyncpa [#allocation6], 0 }
   0x2   :  { %9 = vsyncpa [#allocation4], 0  ;;  %s140_s9 = smov [#allocation2]   ;;  %s68_s13 = scalar_lea.hbm %s196_s0, 256 }
   0x3   :  { %s15_s10 = sshll.u32 %s140_s9, 4  ;;  %p69_p0 = scmp.ne.s32.totalorder %s196_s0, %s68_s13  ;;  %s16_s10 = int_to_ptr.vmem [resolvable:$true] %s15_s10 }
   0x4   :  { %p72_p1 = scmp.lt.u32.totalorder %s68_s13, %s196_s0 }
   0x6   :  { %p74_p2 = pnand %p72_p1, %p69_p0 }
   0x8   :  { %77 = shalt.err (!%p74_p2)
}
   0x9   :  { %s78_s18 = scalar_lea.vmem %s16_s10, 256  ;;  %p83_p4 = scmp.lt.s32.totalorder %s16_s10, %s16_s10 }
   0xa   :  { %p79_p3 = scmp.ne.s32.totalorder %s16_s10, %s78_s18  ;;  %p84_p5 = scmp.lt.s32.totalorder %s78_s18, %s78_s18 }
   0xc   :  { %p85_p6 = por %p84_p5, %p83_p4 }
   0xe   :  { %p86_p7 = pnand %p85_p6, %p79_p3 }
  0x10   :  { %89 = shalt.err (!%p86_p7)
}
  0x11   :  { %s141_s19 = smov 128   ;;  %s142_s20 = smov 8  }
  0x12   :  { %21 = dma.hbm_to_vmem [thread:$0]  %s196_s0, 256, %s16_s10, [#allocation3], %s141_s19, %s141_s19, %s142_s20  }
  0x13   :  { %s143_s23 = smov [#allocation5]   ;;  %s90_s27 = scalar_lea.hbm %s197_s1, 128 }
  0x14   :  { %s28_s24 = sshll.u32 %s143_s23, 4  ;;  %p91_p8 = scmp.ne.s32.totalorder %s197_s1, %s90_s27  ;;  %s29_s24 = int_to_ptr.vmem [resolvable:$true] %s28_s24 }
  0x15   :  { %p94_p9 = scmp.lt.u32.totalorder %s90_s27, %s197_s1 }
  0x17   :  { %p96_p10 = pnand %p94_p9, %p91_p8 }
  0x19   :  { %99 = shalt.err (!%p96_p10)
}
  0x1a   :  { %s100_s4 = scalar_lea.vmem %s29_s24, 128  ;;  %p105_p12 = scmp.lt.s32.totalorder %s29_s24, %s29_s24 }
  0x1b   :  { %p101_p11 = scmp.ne.s32.totalorder %s29_s24, %s100_s4  ;;  %p106_p13 = scmp.lt.s32.totalorder %s100_s4, %s100_s4 }
  0x1d   :  { %p107_p0 = por %p106_p13, %p105_p12 }
  0x1f   :  { %p108_p1 = pnand %p107_p0, %p101_p11 }
  0x21   :  { %111 = shalt.err (!%p108_p1)
}
  0x22   :  { %31 = dma.hbm_to_vmem [thread:$0]  %s197_s1, 128, %s29_s24, [#allocation6]  }
  0x23   :  { %134 = dma.done.wait [#allocation3], 256  }
  0x24   :  { %135 = vsyncadd [#allocation3], 4294967040 }
  0x25   :  { %136 = dma.done.wait [#allocation6], 128  }
  0x26   :  { %137 = vsyncadd [#allocation6], 4294967168  ;;  %s144_s6 = smov [#allocation7]   ;;  %v38_v0 = vld [vmem:[#allocation2] sm:$0xff]  ;;  %v39_v1 = vld [vmem:[#allocation5] sm:$0xff] }
  0x27   :  { %s53_s7 = sshll.u32 %s144_s6, 4  ;;  %v43_v2 = vld [vmem:[#allocation2 + $0x8] sm:$0xff]  ;;  %v40_v3 = vadd.f32 %v39_v1, %v38_v0  ;;  %s54_s7 = int_to_ptr.vmem [resolvable:$true] %s53_s7 }
  0x28   :  { %v45_v4 = vadd.f32 %v43_v2, %v39_v1  ;;  %s112_s8 = scalar_lea.vmem %s54_s7, 256  ;;  %p117_p3 = scmp.lt.s32.totalorder %s54_s7, %s54_s7 }
  0x29   :  { %41 = vst [vmem:[#allocation7] sm:$0xff] %v40_v3  ;;  %p113_p2 = scmp.ne.s32.totalorder %s54_s7, %s112_s8  ;;  %p118_p4 = scmp.lt.s32.totalorder %s112_s8, %s112_s8 }
  0x2a   :  { %46 = vst [vmem:[#allocation7 + $0x8] sm:$0xff] %v45_v4 }
  0x2b   :  { %p119_p5 = por %p118_p4, %p117_p3 }
  0x2d   :  { %p120_p6 = pnand %p119_p5, %p113_p2 }
  0x2f   :  { %123 = shalt.err (!%p120_p6)
}
  0x30   :  { %s124_s10 = scalar_lea.hbm %s198_s2, 256 }
  0x31   :  { %p125_p7 = scmp.ne.s32.totalorder %s198_s2, %s124_s10  ;;  %p128_p8 = scmp.lt.u32.totalorder %s124_s10, %s198_s2 }
  0x33   :  { %p130_p9 = pnand %p128_p8, %p125_p7 }
  0x35   :  { %133 = shalt.err (!%p130_p9)
}
  0x36   :  { %56 = dma.vmem_to_hbm [thread:$0]  %s54_s7, 256, %s198_s2, [#allocation4]  }
  0x37   :  { %138 = dma.done.wait [#allocation4], 256  }
  0x38   :  { %139 = vsyncadd [#allocation4], 4294967040 }
  0x39   :  { %60 = vsyncpa [#allocation3], 1 }
  0x3a   :  { %61 = vsyncpa [#allocation6], 1 }
  0x3b   :  { %62 = vsyncpa [#allocation4], 1 }

</bundles_post_ra>
